<compile_context>
chip_gen: v5e
topology: v5e:2x2
jax: 0.10.0
libtpu: 0.0.40
codegen_flags: <defaults>
</compile_context>

<pallas_src>
import numpy as np
import jax
import jax.numpy as jnp
from jax.experimental import pallas as pl
from jax.experimental.pallas import tpu as pltpu

ALPHA = 0.2            # LeakyReLU negative slope
MASK_VAL = -9e15       # -9000000000000000.0 from the module


def gat_kernel(x_ref, adj_ref, w_ref, o_ref,
               h_s, f1_s, f2_s, m_s, l_s, acc_s):
    # x_ref:   (B, L, D)   input features (caller dtype), constant over kt
    # adj_ref: (B, L, Tk)  raw adjacency key tile (>0 == edge), any numeric dtype
    # w_ref:   (D, F+2)    [W | W@a1 | W@a2], bf16 (or f32)
    # o_ref:   (B, L, F)   output, f32
    # scratch: h (B,L,F), f1/f2/m/l (B,L,1), acc (B,L,F), all f32
    kt = pl.program_id(1)
    B, L, D = x_ref.shape
    Tk = adj_ref.shape[2]
    Fo = h_s.shape[2]
    mm_dtype = w_ref.dtype

    # Per-batch-block init + projection.  kt is the inner grid axis, so this
    # runs once per batch block.  A single MXU matmul yields h plus f1/f2 in
    # its last two columns (a1/a2 were folded into W in the wrapper).
    @pl.when(kt == 0)
    def _():
        x2 = x_ref[...].reshape(B * L, D).astype(mm_dtype)
        h_aug = jnp.dot(x2, w_ref[...], preferred_element_type=jnp.float32)
        h_s[...] = h_aug[:, :Fo].reshape(B, L, Fo)
        f1_s[...] = h_aug[:, Fo:Fo + 1].reshape(B, L, 1)
        f2_s[...] = h_aug[:, Fo + 1:Fo + 2].reshape(B, L, 1)
        m_s[...] = jnp.full_like(m_s, -jnp.inf)
        l_s[...] = jnp.zeros_like(l_s)
        acc_s[...] = jnp.zeros_like(acc_s)

    # Current key tile of h / f2 (pure VMEM slices of the resident scratch).
    k0 = pl.multiple_of(kt * Tk, Tk)
    hk = h_s[:, pl.ds(k0, Tk), :]                       # (B, Tk, F)  f32
    f2k = f2_s[:, pl.ds(k0, Tk), :]                     # (B, Tk, 1)

    # e = leakyrelu(f1 + f2^T), masked exactly like the reference select
    # (fully-masked rows therefore reduce to a uniform softmax, as in torch).
    e = f1_s[...] + jnp.transpose(f2k, (0, 2, 1))       # (B, L, Tk)
    e = jnp.where(e > 0, e, ALPHA * e)
    e = jnp.where(adj_ref[...] > 0, e, MASK_VAL)

    # Online (flash-style) softmax over the key axis.
    m_prev = m_s[...]
    m_new = jnp.maximum(m_prev, jnp.max(e, axis=-1, keepdims=True))
    scale = jnp.exp(m_prev - m_new)
    p = jnp.exp(e - m_new)                              # (B, L, Tk)
    l_s[...] = scale * l_s[...] + jnp.sum(p, axis=-1, keepdims=True)
    acc_s[...] = scale * acc_s[...] + jnp.einsum(
        "blk,bkf->blf", p.astype(mm_dtype), hk.astype(mm_dtype),
        preferred_element_type=jnp.float32)
    m_s[...] = m_new

    # Finalize: normalize (EUP approx reciprocal) + ELU, store true-F columns.
    @pl.when(kt == pl.num_programs(1) - 1)
    def _():
        hp = acc_s[...] * pl.reciprocal(l_s[...], approx=True)
        o_ref[...] = jnp.where(hp > 0, hp,
                               jnp.exp(jnp.minimum(hp, 0.0)) - 1.0)


def gat_forward(x, adj, W, a1, a2, *, use_bf16_matmul=True,
                max_batch_block=8, min_grid_steps=8, key_tile_target=512):
    """x: (N, L, D), adj: (N, L, L) (>0 == edge, any numeric dtype),
    W: (D, F), a1/a2: (F, 1). Returns (N, L, F) float32."""
    N, L, D = x.shape
    F_out = W.shape[1]
    mm_dtype = jnp.bfloat16 if use_bf16_matmul else jnp.float32

    # Tiny (D, F+2) wrapper-side prep; NOT an HBM-scale pass.
    W32 = W.astype(jnp.float32)
    w_aug = jnp.concatenate(
        [W32, W32 @ a1.astype(jnp.float32), W32 @ a2.astype(jnp.float32)],
        axis=1).astype(mm_dtype)                        # (D, F_out + 2)
    F_aug = F_out + 2

    # Key-axis tile: full L unless L is large and 128-aligned.
    if L % 128 == 0 and L > key_tile_target:
        tk = max(t for t in range(128, key_tile_target + 1, 128) if L % t == 0)
    else:
        tk = L
    num_kt = L // tk

    # Generation-aware VMEM budget (<= 75% of physical per-core VMEM).
    try:
        vmem_cap = int(pltpu.get_tpu_info().vmem_capacity_bytes)
    except Exception:
        vmem_cap = 64 << 20        # safe (v7x-sized) fallback
    vmem_budget = int(vmem_cap) * 3 // 4

    x_bytes = jnp.dtype(x.dtype).itemsize
    adj_bytes = jnp.dtype(adj.dtype).itemsize

    def vmem_estimate(b):
        # double-buffered tiles + resident scratch + live f32 intermediates
        tiles = 2 * (b * L * D * x_bytes + b * L * tk * adj_bytes
                     + b * L * F_out * 4) + 2 * D * F_aug * 2
        scratch = b * L * (2 * F_out + 4) * 4
        live = 4 * b * L * tk * 4 + 3 * b * L * F_out * 4   # e/p/mask + h tiles
        return tiles + scratch + live + (4 << 20)            # compiler headroom

    # Largest divisor of N keeping >= min(N, min_grid_steps) batch steps
    # (pipelining + both v7x TensorCores) while fitting the VMEM budget.
    min_steps = min(N, min_grid_steps)
    b_blk = 1
    for d in range(1, min(N, max_batch_block) + 1):
        if N % d == 0 and N // d >= min_steps and vmem_estimate(d) <= vmem_budget:
            b_blk = d
    grid = (N // b_blk, num_kt)

    cost = pl.CostEstimate(
        flops=(2 * N * L * D * F_aug + 2 * N * L * L * F_out
               + 8 * N * L * L + 4 * N * L * F_out),
        transcendentals=N * L * L + N * L * F_out + N * L * num_kt,
        bytes_accessed=(N * L * D * x_bytes + N * L * L * adj_bytes
                        + D * F_aug * 2 + N * L * F_out * 4),
    )

    return pl.pallas_call(
        gat_kernel,
        out_shape=jax.ShapeDtypeStruct((N, L, F_out), jnp.float32),
        grid_spec=pltpu.PrefetchScalarGridSpec(
            num_scalar_prefetch=0,
            grid=grid,
            in_specs=[
                pl.BlockSpec((b_blk, L, D), lambda b, k: (b, 0, 0)),     # x
                # raw adjacency key tile; if xprof shows exposed DMA here,
                # add pipeline_mode=pl.Buffered(3).
                pl.BlockSpec((b_blk, L, tk), lambda b, k: (b, 0, k)),    # adj
                pl.BlockSpec((D, F_aug), lambda b, k: (0, 0)),           # W_aug
            ],
            out_specs=pl.BlockSpec((b_blk, L, F_out), lambda b, k: (b, 0, 0)),
            scratch_shapes=[
                pltpu.VMEM((b_blk, L, F_out), jnp.float32),   # h
                pltpu.VMEM((b_blk, L, 1), jnp.float32),       # f1
                pltpu.VMEM((b_blk, L, 1), jnp.float32),       # f2
                pltpu.VMEM((b_blk, L, 1), jnp.float32),       # running max
                pltpu.VMEM((b_blk, L, 1), jnp.float32),       # running sum
                pltpu.VMEM((b_blk, L, F_out), jnp.float32),   # output accum
            ],
        ),
        compiler_params=pltpu.CompilerParams(
            dimension_semantics=("parallel", "arbitrary"),
            vmem_limit_bytes=int(vmem_budget)),
        cost_estimate=cost,
    )(x, adj, w_aug)


def gat_reference(x, adj, W, a1, a2):
    """Pure-JAX reference mirroring the PyTorch forward exactly (f32)."""
    N, L, D = x.shape
    h = (x.reshape(-1, D) @ W).reshape(N, L, -1)
    f1 = h @ a1                              # (N, L, 1)
    f2 = h @ a2                              # (N, L, 1)
    e = f1 + jnp.transpose(f2, (0, 2, 1))    # (N, L, L)
    e = jnp.where(e > 0, e, ALPHA * e)       # leaky relu
    att = jnp.where(adj > 0, e, MASK_VAL * jnp.ones_like(e))
    att = jax.nn.softmax(att, axis=2)
    hp = att @ h
    return jnp.where(hp > 0, hp, jnp.exp(jnp.minimum(hp, 0.0)) - 1.0)


def xavier_normal(key, shape, gain):
    fan_in, fan_out = shape[0], shape[1]
    std = gain * np.sqrt(2.0 / (fan_in + fan_out))
    return std * jax.random.normal(key, shape, dtype=jnp.float32)


if __name__ == "__main__":
    key = jax.random.PRNGKey(0)
    k_x, k_adj, k_w, k_a1, k_a2 = jax.random.split(key, 5)

    N, L, D, F_out = 2, 8, 16, 32   # batch, num_nodes, input_dim, output_dim

    x = jax.random.normal(k_x, (N, L, D), dtype=jnp.float32)
    # random sparse-ish adjacency with self loops (passed raw to the kernel;
    # callers may also pass a persistent int8/bool adjacency).
    adj = (jax.random.uniform(k_adj, (N, L, L)) > 0.5).astype(jnp.float32)
    adj = jnp.maximum(adj, jnp.eye(L, dtype=jnp.float32)[None])

    gain = np.sqrt(2.0)
    W = xavier_normal(k_w, (D, F_out), gain)
    a1 = xavier_normal(k_a1, (F_out, 1), gain)
    a2 = xavier_normal(k_a2, (F_out, 1), gain)

    out = gat_forward(x, adj, W, a1, a2)
    out = jax.block_until_ready(out)

    ref = gat_reference(x, adj, W, a1, a2)
    # Tolerance relaxed vs. 1e-5: bf16 MXU operands + approx reciprocal are
    # deliberate precision/perf trade-offs (accumulation stays f32).
    np.testing.assert_allclose(np.asarray(out), np.asarray(ref),
                               rtol=5e-2, atol=5e-2)
    print("KERNEL_OK")
</pallas_src>

<mosaic_0001>
module attributes {stable_mosaic.version = 11 : i64} {
  func.func @gat_kernel(%arg0: i32, %arg1: i32, %arg2: memref<1x8x16xf32, #tpu.memory_space<vmem>>, %arg3: memref<1x8x8xf32, #tpu.memory_space<vmem>>, %arg4: memref<16x34xbf16, #tpu.memory_space<vmem>>, %arg5: memref<1x8x32xf32, #tpu.memory_space<vmem>>, %arg6: memref<1x8x32xf32, #tpu.memory_space<vmem>>, %arg7: memref<1x8x1xf32, #tpu.memory_space<vmem>>, %arg8: memref<1x8x1xf32, #tpu.memory_space<vmem>>, %arg9: memref<1x8x1xf32, #tpu.memory_space<vmem>>, %arg10: memref<1x8x1xf32, #tpu.memory_space<vmem>>, %arg11: memref<1x8x32xf32, #tpu.memory_space<vmem>>) attributes {dimension_semantics = [#tpu.dimension_semantics<parallel>, #tpu.dimension_semantics<arbitrary>], iteration_bounds = array<i64: 2, 1>, scalar_prefetch = 0 : i64, scratch_operands = 6 : i64, tpu.core_type = #tpu.core_type<tc>, window_params = [{transform_indices = @transform_0, window_bounds = array<i64: 1, 8, 16>}, {transform_indices = @transform_1, window_bounds = array<i64: 1, 8, 8>}, {pipeline_mode = #tpu.pipeline_mode<synchronous>, transform_indices = @transform_2, window_bounds = array<i64: 16, 34>}, {transform_indices = @transform_3, window_bounds = array<i64: 1, 8, 32>}]} {
    %c0_i32 = arith.constant 0 : i32
    %0 = arith.cmpi eq, %arg1, %c0_i32 : i32
    %1 = arith.extui %0 : i1 to i32
    %c0_i32_0 = arith.constant 0 : i32
    %2 = arith.cmpi ne, %1, %c0_i32_0 : i32
    scf.if %2 {
      %c0_36 = arith.constant 0 : index
      %c0_37 = arith.constant 0 : index
      %c0_38 = arith.constant 0 : index
      %51 = vector.load %arg2[%c0_36, %c0_37, %c0_38] : memref<1x8x16xf32, #tpu.memory_space<vmem>>, vector<1x8x16xf32>
      %52 = vector.shape_cast %51 : vector<1x8x16xf32> to vector<8x16xf32>
      %53 = arith.truncf %52 : vector<8x16xf32> to vector<8x16xbf16>
      %c0_39 = arith.constant 0 : index
      %c0_40 = arith.constant 0 : index
      %54 = vector.load %arg4[%c0_39, %c0_40] : memref<16x34xbf16, #tpu.memory_space<vmem>>, vector<16x34xbf16>
      %cst_41 = arith.constant dense<0.000000e+00> : vector<8x34xf32>
      %55 = tpu.matmul %53, %54, %cst_41 {dimension_numbers = #tpu.dot_dimension_numbers<[1], [0], [0], [1], [0, 0, 1, 1], [], []>} : vector<8x16xbf16>, vector<16x34xbf16>, vector<8x34xf32> -> vector<8x34xf32>
      %56 = vector.extract_strided_slice %55 {offsets = [0, 0], sizes = [8, 32], strides = [1, 1]} : vector<8x34xf32> to vector<8x32xf32>
      %57 = vector.shape_cast %56 : vector<8x32xf32> to vector<1x8x32xf32>
      %c0_42 = arith.constant 0 : index
      %c0_43 = arith.constant 0 : index
      %c0_44 = arith.constant 0 : index
      %58 = vector.load %arg6[%c0_42, %c0_43, %c0_44] : memref<1x8x32xf32, #tpu.memory_space<vmem>>, vector<1x8x32xf32>
      tpu.vector_store %arg6[%c0_42, %c0_43, %c0_44], %57 {strides = array<i32>} : memref<1x8x32xf32, #tpu.memory_space<vmem>>, vector<1x8x32xf32>,
      %59 = vector.extract_strided_slice %55 {offsets = [0, 32], sizes = [8, 1], strides = [1, 1]} : vector<8x34xf32> to vector<8x1xf32>
      %60 = vector.shape_cast %59 : vector<8x1xf32> to vector<1x8x1xf32>
      %c0_45 = arith.constant 0 : index
      %c0_46 = arith.constant 0 : index
      %c0_47 = arith.constant 0 : index
      %61 = vector.load %arg7[%c0_45, %c0_46, %c0_47] : memref<1x8x1xf32, #tpu.memory_space<vmem>>, vector<1x8x1xf32>
      tpu.vector_store %arg7[%c0_45, %c0_46, %c0_47], %60 {strides = array<i32>} : memref<1x8x1xf32, #tpu.memory_space<vmem>>, vector<1x8x1xf32>,
      %62 = vector.extract_strided_slice %55 {offsets = [0, 33], sizes = [8, 1], strides = [1, 1]} : vector<8x34xf32> to vector<8x1xf32>
      %63 = vector.shape_cast %62 : vector<8x1xf32> to vector<1x8x1xf32>
      %c0_48 = arith.constant 0 : index
      %c0_49 = arith.constant 0 : index
      %c0_50 = arith.constant 0 : index
      %64 = vector.load %arg8[%c0_48, %c0_49, %c0_50] : memref<1x8x1xf32, #tpu.memory_space<vmem>>, vector<1x8x1xf32>
      tpu.vector_store %arg8[%c0_48, %c0_49, %c0_50], %63 {strides = array<i32>} : memref<1x8x1xf32, #tpu.memory_space<vmem>>, vector<1x8x1xf32>,
      %cst_51 = arith.constant 0xFF800000 : f32
      %65 = vector.broadcast %cst_51 : f32 to vector<1x8x1xf32>
      %c0_52 = arith.constant 0 : index
      %c0_53 = arith.constant 0 : index
      %c0_54 = arith.constant 0 : index
      %66 = vector.load %arg9[%c0_52, %c0_53, %c0_54] : memref<1x8x1xf32, #tpu.memory_space<vmem>>, vector<1x8x1xf32>
      tpu.vector_store %arg9[%c0_52, %c0_53, %c0_54], %65 {strides = array<i32>} : memref<1x8x1xf32, #tpu.memory_space<vmem>>, vector<1x8x1xf32>,
      %cst_55 = arith.constant 0.000000e+00 : f32
      %67 = vector.broadcast %cst_55 : f32 to vector<1x8x1xf32>
      %c0_56 = arith.constant 0 : index
      %c0_57 = arith.constant 0 : index
      %c0_58 = arith.constant 0 : index
      %68 = vector.load %arg10[%c0_56, %c0_57, %c0_58] : memref<1x8x1xf32, #tpu.memory_space<vmem>>, vector<1x8x1xf32>
      tpu.vector_store %arg10[%c0_56, %c0_57, %c0_58], %67 {strides = array<i32>} : memref<1x8x1xf32, #tpu.memory_space<vmem>>, vector<1x8x1xf32>,
      %cst_59 = arith.constant 0.000000e+00 : f32
      %69 = vector.broadcast %cst_59 : f32 to vector<1x8x32xf32>
      %c0_60 = arith.constant 0 : index
      %c0_61 = arith.constant 0 : index
      %c0_62 = arith.constant 0 : index
      %70 = vector.load %arg11[%c0_60, %c0_61, %c0_62] : memref<1x8x32xf32, #tpu.memory_space<vmem>>, vector<1x8x32xf32>
      tpu.vector_store %arg11[%c0_60, %c0_61, %c0_62], %69 {strides = array<i32>} : memref<1x8x32xf32, #tpu.memory_space<vmem>>, vector<1x8x32xf32>,
    } else {
    }
    %c8_i32 = arith.constant 8 : i32
    %3 = arith.muli %arg1, %c8_i32 : i32
    %4 = tpu.assume_multiple %3, 8 : i32
    %c0 = arith.constant 0 : index
    %5 = arith.index_cast %4 : i32 to index
    %c0_1 = arith.constant 0 : index
    %6 = vector.load %arg6[%c0, %5, %c0_1] : memref<1x8x32xf32, #tpu.memory_space<vmem>>, vector<1x8x32xf32>
    %c0_2 = arith.constant 0 : index
    %7 = arith.index_cast %4 : i32 to index
    %c0_3 = arith.constant 0 : index
    %8 = vector.load %arg8[%c0_2, %7, %c0_3] : memref<1x8x1xf32, #tpu.memory_space<vmem>>, vector<1x8x1xf32>
    %c0_4 = arith.constant 0 : index
    %c0_5 = arith.constant 0 : index
    %c0_6 = arith.constant 0 : index
    %9 = vector.load %arg7[%c0_4, %c0_5, %c0_6] : memref<1x8x1xf32, #tpu.memory_space<vmem>>, vector<1x8x1xf32>
    %10 = tpu.transpose %8, [0, 2, 1] : vector<1x8x1xf32> -> vector<1x1x8xf32>
    %11 = vector.broadcast %9 : vector<1x8x1xf32> to vector<1x8x8xf32>
    %12 = vector.broadcast %10 : vector<1x1x8xf32> to vector<1x8x8xf32>
    %13 = arith.addf %11, %12 : vector<1x8x8xf32>
    %cst = arith.constant 0.000000e+00 : f32
    %14 = vector.broadcast %cst : f32 to vector<1x8x8xf32>
    %15 = arith.cmpf ogt, %13, %14 : vector<1x8x8xf32>
    %cst_7 = arith.constant 2.000000e-01 : f32
    %16 = vector.broadcast %cst_7 : f32 to vector<1x8x8xf32>
    %17 = arith.mulf %16, %13 : vector<1x8x8xf32>
    %18 = arith.select %15, %13, %17 : vector<1x8x8xi1>, vector<1x8x8xf32>
    %c0_8 = arith.constant 0 : index
    %c0_9 = arith.constant 0 : index
    %c0_10 = arith.constant 0 : index
    %19 = vector.load %arg3[%c0_8, %c0_9, %c0_10] : memref<1x8x8xf32, #tpu.memory_space<vmem>>, vector<1x8x8xf32>
    %cst_11 = arith.constant 0.000000e+00 : f32
    %20 = vector.broadcast %cst_11 : f32 to vector<1x8x8xf32>
    %21 = arith.cmpf ogt, %19, %20 : vector<1x8x8xf32>
    %cst_12 = arith.constant -9.000000e+15 : f32
    %22 = vector.broadcast %cst_12 : f32 to vector<1x8x8xf32>
    %23 = arith.select %21, %18, %22 : vector<1x8x8xi1>, vector<1x8x8xf32>
    %c0_13 = arith.constant 0 : index
    %c0_14 = arith.constant 0 : index
    %c0_15 = arith.constant 0 : index
    %24 = vector.load %arg9[%c0_13, %c0_14, %c0_15] : memref<1x8x1xf32, #tpu.memory_space<vmem>>, vector<1x8x1xf32>
    %cst_16 = arith.constant dense<0xFF800000> : vector<1x8xf32>
    %25 = vector.multi_reduction <maximumf>, %23, %cst_16 [2] : vector<1x8x8xf32> to vector<1x8xf32>
    %26 = vector.shape_cast %25 : vector<1x8xf32> to vector<1x8x1xf32>
    %27 = arith.maximumf %24, %26 : vector<1x8x1xf32>
    %28 = arith.subf %24, %27 : vector<1x8x1xf32>
    %29 = math.exp %28 : vector<1x8x1xf32>
    %30 = vector.broadcast %27 : vector<1x8x1xf32> to vector<1x8x8xf32>
    %31 = arith.subf %23, %30 : vector<1x8x8xf32>
    %32 = math.exp %31 : vector<1x8x8xf32>
    %c0_17 = arith.constant 0 : index
    %c0_18 = arith.constant 0 : index
    %c0_19 = arith.constant 0 : index
    %33 = vector.load %arg10[%c0_17, %c0_18, %c0_19] : memref<1x8x1xf32, #tpu.memory_space<vmem>>, vector<1x8x1xf32>
    %34 = arith.mulf %29, %33 : vector<1x8x1xf32>
    %cst_20 = arith.constant dense<0.000000e+00> : vector<1x8xf32>
    %35 = vector.multi_reduction <add>, %32, %cst_20 [2] : vector<1x8x8xf32> to vector<1x8xf32>
    %36 = vector.shape_cast %35 : vector<1x8xf32> to vector<1x8x1xf32>
    %37 = arith.addf %34, %36 : vector<1x8x1xf32>
    %c0_21 = arith.constant 0 : index
    %c0_22 = arith.constant 0 : index
    %c0_23 = arith.constant 0 : index
    %38 = vector.load %arg10[%c0_21, %c0_22, %c0_23] : memref<1x8x1xf32, #tpu.memory_space<vmem>>, vector<1x8x1xf32>
    tpu.vector_store %arg10[%c0_21, %c0_22, %c0_23], %37 {strides = array<i32>} : memref<1x8x1xf32, #tpu.memory_space<vmem>>, vector<1x8x1xf32>,
    %c0_24 = arith.constant 0 : index
    %c0_25 = arith.constant 0 : index
    %c0_26 = arith.constant 0 : index
    %39 = vector.load %arg11[%c0_24, %c0_25, %c0_26] : memref<1x8x32xf32, #tpu.memory_space<vmem>>, vector<1x8x32xf32>
    %40 = vector.broadcast %29 : vector<1x8x1xf32> to vector<1x8x32xf32>
    %41 = arith.mulf %40, %39 : vector<1x8x32xf32>
    %42 = arith.truncf %32 : vector<1x8x8xf32> to vector<1x8x8xbf16>
    %43 = arith.truncf %6 : vector<1x8x32xf32> to vector<1x8x32xbf16>
    "tpu.trace_start"() <{level = 10 : i32, message = "blk,bkf->blf"}> : () -> ()
    %cst_27 = arith.constant dense<0.000000e+00> : vector<1x8x32xf32>
    %44 = tpu.matmul %42, %43, %cst_27 {dimension_numbers = #tpu.dot_dimension_numbers<[2], [1], [1], [2], [0, 0, 0, 1, 1, 2], [0], [0]>} : vector<1x8x8xbf16>, vector<1x8x32xbf16>, vector<1x8x32xf32> -> vector<1x8x32xf32>
    "tpu.trace_stop"() : () -> ()
    %45 = arith.addf %41, %44 : vector<1x8x32xf32>
    %c0_28 = arith.constant 0 : index
    %c0_29 = arith.constant 0 : index
    %c0_30 = arith.constant 0 : index
    %46 = vector.load %arg11[%c0_28, %c0_29, %c0_30] : memref<1x8x32xf32, #tpu.memory_space<vmem>>, vector<1x8x32xf32>
    tpu.vector_store %arg11[%c0_28, %c0_29, %c0_30], %45 {strides = array<i32>} : memref<1x8x32xf32, #tpu.memory_space<vmem>>, vector<1x8x32xf32>,
    %c0_31 = arith.constant 0 : index
    %c0_32 = arith.constant 0 : index
    %c0_33 = arith.constant 0 : index
    %47 = vector.load %arg9[%c0_31, %c0_32, %c0_33] : memref<1x8x1xf32, #tpu.memory_space<vmem>>, vector<1x8x1xf32>
    tpu.vector_store %arg9[%c0_31, %c0_32, %c0_33], %27 {strides = array<i32>} : memref<1x8x1xf32, #tpu.memory_space<vmem>>, vector<1x8x1xf32>,
    %c0_i32_34 = arith.constant 0 : i32
    %48 = arith.cmpi eq, %arg1, %c0_i32_34 : i32
    %49 = arith.extui %48 : i1 to i32
    %c0_i32_35 = arith.constant 0 : i32
    %50 = arith.cmpi ne, %49, %c0_i32_35 : i32
    scf.if %50 {
      %c0_36 = arith.constant 0 : index
      %c0_37 = arith.constant 0 : index
      %c0_38 = arith.constant 0 : index
      %51 = vector.load %arg11[%c0_36, %c0_37, %c0_38] : memref<1x8x32xf32, #tpu.memory_space<vmem>>, vector<1x8x32xf32>
      %c0_39 = arith.constant 0 : index
      %c0_40 = arith.constant 0 : index
      %c0_41 = arith.constant 0 : index
      %52 = vector.load %arg10[%c0_39, %c0_40, %c0_41] : memref<1x8x1xf32, #tpu.memory_space<vmem>>, vector<1x8x1xf32>
      %53 = tpu.reciprocal %52 {approx = true} : vector<1x8x1xf32> -> vector<1x8x1xf32>
      %54 = vector.broadcast %53 : vector<1x8x1xf32> to vector<1x8x32xf32>
      %55 = arith.mulf %51, %54 : vector<1x8x32xf32>
      %cst_42 = arith.constant 0.000000e+00 : f32
      %56 = vector.broadcast %cst_42 : f32 to vector<1x8x32xf32>
      %57 = arith.cmpf ogt, %55, %56 : vector<1x8x32xf32>
      %cst_43 = arith.constant 0.000000e+00 : f32
      %58 = vector.broadcast %cst_43 : f32 to vector<1x8x32xf32>
      %59 = arith.minimumf %55, %58 : vector<1x8x32xf32>
      %60 = math.exp %59 : vector<1x8x32xf32>
      %cst_44 = arith.constant 1.000000e+00 : f32
      %61 = vector.broadcast %cst_44 : f32 to vector<1x8x32xf32>
      %62 = arith.subf %60, %61 : vector<1x8x32xf32>
      %63 = arith.select %57, %55, %62 : vector<1x8x32xi1>, vector<1x8x32xf32>
      %c0_45 = arith.constant 0 : index
      %c0_46 = arith.constant 0 : index
      %c0_47 = arith.constant 0 : index
      %64 = vector.load %arg5[%c0_45, %c0_46, %c0_47] : memref<1x8x32xf32, #tpu.memory_space<vmem>>, vector<1x8x32xf32>
      tpu.vector_store %arg5[%c0_45, %c0_46, %c0_47], %63 {strides = array<i32>} : memref<1x8x32xf32, #tpu.memory_space<vmem>>, vector<1x8x32xf32>,
    } else {
    }
    return
  }
  func.func @transform_0(%arg0: i32, %arg1: i32) -> (i32, i32, i32) {
    %c0_i32 = arith.constant 0 : i32
    %c0_i32_0 = arith.constant 0 : i32
    %c0_i32_1 = arith.constant 0 : i32
    return %arg0, %c0_i32, %c0_i32_0 : i32, i32, i32
  }
  func.func @transform_1(%arg0: i32, %arg1: i32) -> (i32, i32, i32) {
    %c0_i32 = arith.constant 0 : i32
    %c0_i32_0 = arith.constant 0 : i32
    return %arg0, %c0_i32, %arg1 : i32, i32, i32
  }
  func.func @transform_2(%arg0: i32, %arg1: i32) -> (i32, i32) {
    %c0_i32 = arith.constant 0 : i32
    %c0_i32_0 = arith.constant 0 : i32
    %c0_i32_1 = arith.constant 0 : i32
    return %c0_i32, %c0_i32_0 : i32, i32
  }
  func.func @transform_3(%arg0: i32, %arg1: i32) -> (i32, i32, i32) {
    %c0_i32 = arith.constant 0 : i32
    %c0_i32_0 = arith.constant 0 : i32
    %c0_i32_1 = arith.constant 0 : i32
    return %arg0, %c0_i32, %c0_i32_0 : i32, i32, i32
  }
}

</mosaic_0001>

<bundles_post_ra>
// kernel: tpu_custom_call.1
= control target key start
LH: loop header
LB: loop body
LE: loop exit
PB: predicated region body
PF: predicated region fallthrough
CT: control target
= control target key end

     0   :  { %s1068_s0 = inlined_call_operand.hbm [shape: f32[2,8,16], index: 0, kind: input, shape index: {}]   ;;  %s1069_s1 = inlined_call_operand.hbm [shape: f32[2,8,8], index: 1, kind: input, shape index: {}]   ;;  %s1070_s2 = inlined_call_operand.hbm [shape: bf16[16,34], index: 2, kind: input, shape index: {}]   ;;  %s1071_s3 = inlined_call_operand.hbm [shape: f32[2,8,32], index: 3, kind: output, shape index: {}]  }
   0x1   :  { %1074 = sst [smem:[#allocation22_spill]] %s1070_s2 }
   0x2   :  { %8 = vsyncpa [#allocation9], 0 }
   0x3   :  { %10 = vsyncpa [#allocation9 + $0x1], 0 }
   0x4   :  { %11 = vsyncpa [#allocation12], 0 }
   0x5   :  { %13 = vsyncpa [#allocation12 + $0x1], 0 }
   0x6   :  { %14 = vsyncpa [#allocation10], 0 }
   0x7   :  { %16 = vsyncpa [#allocation10 + $0x1], 0  ;;  %s896_s12 = smov 0   ;;  %s898_s13 = smov 0  }
   0x8   :  { %s900_s14 = smov 0   ;;  %s902_s15 = smov 0  }
   0x9   :  { %s904_s16 = smov 0   ;;  %s906_s17 = smov 0  }
   0xa LB: > { %1075 = sst [smem:[#allocation19_spill]] %s862_s16  ;;  %s927_s18 = sadd.s32 4294967295, %s866_s17   ;;  %s866_s17 = sphi %s906_s17, %s22_s17   ;;  %s862_s16 = sphi %s904_s16, %s1090_s16   ;;  %s858_s15 = sphi %s902_s15, %s1085_s15   ;;  %s854_s14 = sphi %s900_s14, %s1089_s14   ;;  %s850_s13 = sphi %s898_s13, %s1088_s13   ;;  %s846_s12 = sphi %s896_s12, %s1087_s12  }
   0xb   : > { %p566_p0 = scmp.ge.s32.totalorder %s866_s17, 1  ;;  %p55_p1 = scmp.eq.s32.totalorder %s927_s18, 0 }
   0xc   : > { %p140_p2 = scmp.lt.s32.totalorder %s866_s17, 3  ;;  %s1076_s2 = sld [smem:[#allocation22_spill]] }
   0xd   : > { %s868_s23 = smov [#allocation13]   ;;  %p568_p6 = scmp.ge.s32.totalorder %s866_s17, 2 }
   0xe   : > { %p935_p3 = pnand %p566_p0, %p140_p2  ;;  %s153_s24 = sshll.u32 %s868_s23, 4  ;;  %s154_s24 = int_to_ptr.vmem [resolvable:$true] %s153_s24 }
   0xf   : > { %s869_s25 = smov 64   ;;  %s870_s26 = smov 4  }
  0x10   : > { %p600_p4 = pneg %p935_p3  ;;  %s565_s27 = sadd.s32 4294967294, %s866_s17  }
  0x11   : > { %s34_s28 = sadd.s32 1, %s862_s16  ;;  %s41_s29 = sadd.s32 1, %s854_s14 }
  0x12   : > { %s151_s21 = sshll.u32 %s1076_s2, 4  ;;  %p601_p5 = pnand %p600_p4, %p55_p1  ;;  %s152_s21 = int_to_ptr.hbm [resolvable:$true] %s151_s21 }
  0x13   : > { %p36_p7 = scmp.ge.s32.totalorder %s34_s28, 2  ;;  %p48_p8 = scmp.ne.s32.totalorder %s854_s14, %s850_s13 }
  0x14   : > { %603 = dma.hbm_to_vmem [thread:$0]  (!%p601_p5), %s152_s21, 128, %s154_s24, [#allocation12], %s869_s25, %s869_s25, %s870_s26  }
  0x15   : > { %p49_p9 = scmp.eq.s32.totalorder %s866_s17, 0  ;;  %p54_p10 = scmp.ne.s32.totalorder %s850_s13, %s846_s12 }
  0x16   : > { %s1092_s28 = smov (%p36_p7, %s34_s28), 0  ;;  %p127_p13 = scmp.eq.s32.totalorder %s927_s18, 1 }
  0x17   : > { %1078 = sst [smem:[#allocation20_spill]] %s1092_s28  ;;  %p954_p11 = por %p49_p9, %p48_p8 }
  0x18   : > { %p960_p12 = por %p55_p1, %p54_p10  ;;  %s38_s5 = ssub.s32 %s862_s16, %s1092_s28 }
  0x19   : > { %p39_p0 = scmp.eq.s32.totalorder %s38_s5, 0  ;;  %p133_p2 = scmp.eq.s32.totalorder %s565_s27, 1 }
  0x1a   : > { %p967_p4 = por %p127_p13, %p48_p8  ;;  %p616_p5 = scmp.lt.s32.totalorder %s866_s17, 2 }
  0x1b   : > { %s973_s7 = scalar_select %p39_p0, %s854_s14, %s41_s29  }
  0x1c   : > { %p975_p7 = por %p133_p2, %p54_p10  ;;  %s167_s9 = sand.u32 1, %s854_s14  }
  0x1d   : > { %1082 = sst [smem:[#allocation21_spill]] %s973_s7  ;;  %s569_s10 = sshll.u32 %s167_s9, 3 }
  0x1e   : > { %s570_s11 = sshll.u32 %s862_s16, 3  ;;  %s171_s23 = scalar_lea.vmem [#allocation8], %s569_s10 }
  0x1f   : > { %s175_s21 = scalar_lea.hbm %s1068_s0, %s570_s11  ;;  %s179_s24 = sshll.u32 %s171_s23, 4  ;;  %s180_s24 = int_to_ptr.vmem [resolvable:$true] %s179_s24 }
  0x20   : > { %s177_s25 = sshll.u32 %s175_s21, 4  ;;  %p605_p8 = pnand %p616_p5, %p954_p11  ;;  %s178_s25 = int_to_ptr.hbm [resolvable:$true] %s177_s25 }
  0x21   : > { %s195_s29 = scalar_lea.hbm %s1069_s1, %s570_s11  ;;  %s186_s5 = sand.u32 1, %s866_s17  }
  0x22   : > { %s168_s2 = scalar_lea.sflag [#allocation9], %s167_s9  ;;  %s197_s28 = sshll.u32 %s195_s29, 4  ;;  %s198_s28 = int_to_ptr.hbm [resolvable:$true] %s197_s28 }
  0x23   : > { %607 = dma.hbm_to_vmem [thread:$0]  (!%p605_p8), %s178_s25, 128, %s180_s24, %s168_s2  }
  0x24   : > { %s190_s16 = scalar_lea.vmem [#allocation11], %s569_s10  ;;  %s187_s19 = scalar_lea.sflag [#allocation12], %s186_s5 }
  0x25   : > { %s199_s7 = sshll.u32 %s190_s16, 4  ;;  %208 = sbr.rel (%p935_p3) target bundleno = 992 (0x3e0), region = 32  ;;  %s200_s7 = int_to_ptr.vmem [resolvable:$true] %s199_s7 }
  0x26   : > { %610 = dma.hbm_to_vmem [thread:$0]  (!%p605_p8), %s198_s28, 128, %s200_s7, %s187_s19  }
  0x27   : > { %s993_s30 = sand.u32 (!%p935_p3), 1, %s850_s13  }
  0x28   : > { %s996_s11 = sshll.u32 (!%p935_p3), %s993_s30, 3  ;;  %s211_s2 = scalar_lea.sflag (!%p935_p3), [#allocation9], %s993_s30 }
  0x29   : > { %s214_s9 = scalar_lea.vmem (!%p935_p3), [#allocation8], %s996_s11 }
  0x2a   : > { %829 = dma.done.wait (%p960_p12), %s211_s2, 128  }
  0x2b   : > { %831 = vsyncadd (%p960_p12), %s211_s2, 4294967168  ;;  %s220_s16 = sand.u32 1, %s927_s18   ;;  %s224_s28 = scalar_lea.vmem [#allocation11], %s996_s11 }
  0x2c   : > { %s221_s22 = scalar_lea.sflag [#allocation12], %s220_s16 }
  0x2d   : > { %833 = dma.done.wait (%p960_p12), %s221_s22, 128  }
  0x2e   : > { %835 = vsyncadd (%p960_p12), %s221_s22, 4294967168 }
  0x2f   : > { %837 = dma.done.wait (%p55_p1), [#allocation12], 128  }
  0x30   : > { %839 = vsyncadd (%p55_p1), [#allocation12], 4294967168  ;;  %v589_v0 = vld [vmem:[#allocation13] sm:$0xff]  ;;  %vm273_vm0 = vcmask 130048   ;;  %vm290_vm1 = vcmask 261120   ;;  %v871_v3 = vmov 0.0  }
  0x31   : > { %v263_v1 = vld [vmem:[%s214_s9] sm:$0xff]  ;;  %284 = vmatpush.bf16.msra.mxu0 %v589_v0  ;;  %304 = vst.msk [vmem:[#allocation7] sm:$0xff] %vm290_vm1, %v871_v3  ;;  %vm296_vm2 = vcmask 7168   ;;  %s872_s4 = smov 96   ;;  %vm393_vm3 = vcmask 1043456   ;;  %s873_s18 = smov 95  }
  0x32   : > { %v264_v2 = vpack.c.bf16 %v263_v1, %v263_v1  ;;  %303 = vst.msk [vmem:[#allocation6] sm:$0xff] %vm296_vm2, %v871_v3  ;;  %v874_v9 = vmov 0   ;;  %v875_v14 = vmov -inf   ;;  %v353_v18 = vld [vmem:[%s224_s28] sm:$0xff]  ;;  %vm357_vm6 = vcmask 64512   ;;  %s586_s7 = sshll.u32 %s858_s15, 3 }
  0x33   : > { %675 = vset.pattern.permute.xlu1 %v874_v9  ;;  %676 = vset.pattern.permute.xlu2 %v874_v9  ;;  %302 = vst.msk [vmem:[#allocation5] sm:$0xff] %vm296_vm2, %v875_v14  ;;  %vm354_vm5 = vcmp.gt.f32.partialorder %v353_v18, 0.0  ;;  %s444_s21 = scalar_lea.hbm %s1071_s3, %s586_s7  ;;  %s257_s23 = scalar_lea.vmem [#allocation14], %s996_s11 }
  0x34   : > { %582 = vmatmul.msk.bf16.vlgmr.msra.gmra.mxu0 %vm273_vm0, %v264_v2  ;;  %677 = vset.pattern.permute.xlu0 %v874_v9  ;;  %s446_s24 = sshll.u32 %s257_s23, 4  ;;  %s448_s25 = sshll.u32 %s444_s21, 4  ;;  %s447_s24 = int_to_ptr.vmem [resolvable:$true] %s446_s24  ;;  %s449_s25 = int_to_ptr.hbm [resolvable:$true] %s448_s25 }
  0x35   : > { %s434_s26 = scalar_lea.sflag [#allocation10], %s993_s30  ;;  %s790_s27 = sshra.s32 %s449_s25, 4  ;;  %s791_s27 = int_to_ptr.hbm [resolvable:$true] %s790_s27 }
  0x36   : > { %s792_s15 = scalar_lea.hbm %s791_s27, 8  ;;  %s796_s19 = scalar_lea.hbm %s1071_s3, 16 }
  0x37   : > { %p793_p1 = scmp.ne.s32.totalorder %s791_s27, %s792_s15  ;;  %p797_p10 = scmp.lt.s32.totalorder %s791_s27, %s1071_s3 }
  0x38   : > { %v381_v40 = vld [vmem:[#allocation7] sm:$0xff]  ;;  %p798_p11 = scmp.lt.s32.totalorder %s796_s19, %s792_s15 }
  0x39   : > { %v373_v36 = vld [vmem:[#allocation6] sm:$0xff]  ;;  %p794_p3 = pnand %p793_p1, %p967_p4 }
  0x3a   : > { %v356_v24 = vld [vmem:[#allocation5] sm:$0xff]  ;;  %p799_p12 = por %p798_p11, %p797_p10 }
  0x3b   : > { %p795_p9 = pneg %p794_p3 }
  0x3d   : > { %p800_p13 = pnand %p799_p12, %p795_p9 }
  0xb1   : > { %v286_v4 = vpop.f32.mrf.mxu0 }
  0xb2   : > { %291 = vst.msk [vmem:[#allocation2] sm:$0xff] %vm290_vm1, %v286_v4  ;;  %293 = vrot.lane.b32.xlu0 %v286_v4, %s872_s4 }
  0xb9   : > { %v288_v5 = vpop.f32.mrf.mxu0  ;;  %v307_v6 = vld [vmem:[#allocation2] sm:$0xff] }
  0xba   : > { %298 = vrot.lane.b32.xlu0 %v286_v4, %s873_s18  ;;  %v389_v7 = vpack.c.bf16 %v307_v6, %v307_v6 }
  0xbc   : > { %v395_v8 = vsel %vm393_vm3, %v389_v7, 0 }
  0xbd   : > { %404 = vmatpush.bf16.msra.mxu1 %v395_v8 }
 0x124   : > { %v294_v10 = vpop.permute.xlu0 %293 }
 0x125   : > { %297 = vst.msk [vmem:[#allocation3] sm:$0xff] %vm296_vm2, %v294_v10 }
 0x12c   : > { %v299_v11 = vpop.permute.xlu0 %298  ;;  %v310_v12 = vld [vmem:[#allocation3] sm:$0xff] }
 0x12d   : > { %301 = vst.msk [vmem:[#allocation4] sm:$0xff] %vm296_vm2, %v299_v11  ;;  %345 = vperm.xlu1 %675, %v310_v12  }
 0x134   : > { %v309_v13 = vld [vmem:[#allocation4] sm:$0xff] }
 0x162   : > { %311 = vxpose.xlu1.b32.start.end [1/1] (short) (narrow) %v309_v13, 8 }
 0x19f   : > { %v346_v15 = vpop.permute.xlu1 %345 }
 0x206   : > { %v327_v16 = vpop.trf.xlu1 }
 0x207   : > { %v348_v17 = vperm.slane %v327_v16, 0 }
 0x209   : > { %v349_v19 = vadd.f32 %v348_v17, %v346_v15 }
 0x20b   : > { %vm350_vm4 = vcmp.gt.f32.partialorder %v349_v19, 0.0  ;;  %v351_v20 = vmul.f32 0.2, %v349_v19 }
 0x20d   : > { %v352_v21 = vsel %vm350_vm4, %v349_v19, %v351_v20 }
 0x20e   : > { %v355_v22 = vsel %vm354_vm5, %v352_v21, -9e+15 }
 0x20f   : > { %v358_v23 = vsel %vm357_vm6, %v355_v22, -inf }
 0x210   : > { %359 = vmax.xlane.f32.xlu2 %v358_v23 }
 0x283   : > { %v360_v25 = vpop.xlane.xlu2 %359 }
 0x284   : > { %v361_v26 = vmax.f32 %v356_v24, %v360_v25 }
 0x286   : > { %v362_v27 = vsub.f32 %v356_v24, %v361_v26  ;;  %413 = vst.msk [vmem:[#allocation5] sm:$0xff] %vm296_vm2, %v361_v26  ;;  %367 = vperm.xlu2 %676, %v361_v26  }
 0x288   : > { %v363_v28 = vmul.f32 1.442695, %v362_v27 }
 0x28a   : > { %678 = vpow2.f32 %v363_v28 }
 0x290   : > { %v679_v29 = vpop.eup %678 }
 0x291   : > { %384 = vperm.xlu2 %676, %v679_v29   ;;  %v374_v37 = vmul.f32 %v679_v29, %v373_v36 }
 0x2e0   : > { %v368_v30 = vpop.permute.xlu2 %367 }
 0x2e1   : > { %v370_v31 = vsub.f32 %v355_v22, %v368_v30 }
 0x2e3   : > { %v371_v32 = vmul.f32 1.442695, %v370_v31 }
 0x2e5   : > { %680 = vpow2.f32 %v371_v32 }
 0x2eb   : > { %v681_v33 = vpop.eup %680  ;;  %v385_v41 = vpop.permute.xlu2 %384 }
 0x2ec   : > { %v375_v34 = vsel %vm357_vm6, %v681_v33, 0.0  ;;  %v388_v35 = vpack.c.bf16 %v681_v33, %v681_v33  ;;  %v387_v42 = vmul.f32 %v385_v41, %v381_v40 }
 0x2ed   : > { %376 = vadd.xlane.f32.xlu0 %v375_v34 }
 0x2ee   : > { %583 = vmatmul.msk.bf16.vlgmr.msra.gmra.mxu1 %vm357_vm6, %v388_v35 }
 0x360   : > { %v377_v38 = vpop.xlane.xlu0 %376 }
 0x361   : > { %v378_v39 = vadd.f32 %v377_v38, %v374_v37 }
 0x363   : > { %380 = vst.msk [vmem:[#allocation6] sm:$0xff] %vm296_vm2, %v378_v39 }
 0x36a   : > { %v418_v43 = vld [vmem:[#allocation6] sm:$0xff] }
 0x36b   : > { %v406_v44 = vpop.f32.mrf.mxu1  ;;  %682 = vrcp.f32 %v418_v43 }
 0x36c   : > { %v410_v45 = vadd.f32 %v406_v44, %v387_v42 }
 0x36e   : > { %412 = vst.msk [vmem:[#allocation7] sm:$0xff] %vm290_vm1, %v410_v45 }
 0x371   : > { %v683_v46 = vpop.eup %682 }
 0x372   : > { %422 = vperm.xlu2 %676, %v683_v46  }
 0x373   : > { %v408_v47 = vpop.f32.mrf.mxu1 }
 0x375   : > { %v417_v49 = vld [vmem:[#allocation7] sm:$0xff] }
 0x3cc   : > { %v423_v48 = vpop.permute.xlu2 %422 }
 0x3cd   : > { %v425_v50 = vmul.f32 %v423_v48, %v417_v49 }
 0x3cf   : > { %v427_v51 = vmin.f32 %v425_v50, 0.0  ;;  %vm426_vm7 = vcmp.gt.f32.partialorder %v425_v50, 0.0 }
 0x3d1   : > { %v428_v52 = vmul.f32 1.442695, %v427_v51 }
 0x3d3   : > { %684 = vpow2.f32 %v428_v52 }
 0x3d9   : > { %v685_v53 = vpop.eup %684 }
 0x3da   : > { %v584_v54 = vadd.f32 -1.0, %v685_v53 }
 0x3dc   : > { %v431_v55 = vsel %vm426_vm7, %v425_v50, %v584_v54 }
 0x3dd   : > { %432 = vst.msk [vmem:[%s257_s23] sm:$0xff] %vm290_vm1, %v431_v55 }
 0x3de   : > { %803 = shalt.err (!%p800_p13)
}
 0x3df   : > { %598 = dma.vmem_to_hbm [thread:$0]  (%p967_p4), %s447_s24, 128, %s449_s25, %s434_s26  }
 0x3e0 PF: > { %s460_s30 = sand.u32 1, %s846_s12   ;;  %p612_p0 = pnand %p568_p6, %p975_p7 }
 0x3e1   : > { %s461_s9 = scalar_lea.sflag [#allocation10], %s460_s30 }
 0x3e2   : > { %p613_p2 = pneg %p612_p0 }
 0x3e4   : > { %841 = dma.done.wait (%p613_p2), %s461_s9, 128  }
 0x3e5   : > { %843 = vsyncadd (%p613_p2), %s461_s9, 4294967168  ;;  %s22_s17 = sadd.s32 1, %s866_s17   ;;  %s1084_s16 = sld [smem:[#allocation21_spill]] }
 0x3e6   : > { %p19_p5 = scmp.ge.s32.totalorder %s22_s17, 4   ;;  %s1085_s15 = sld [smem:[#allocation19_spill]] }
 0x3e7   : > { %s1086_s6 = sld [smem:[#allocation20_spill]]  ;;  %s1087_s12 = smov %s850_s13 }
 0x3e8   : > { %s1088_s13 = smov %s854_s14 }
 0x3e9   :  { %21 = sbr.rel (!%p19_p5) target bundleno = 10 (0xa), region = 104 }
 0x3eb   : > { %s1089_s14 = smov %s1084_s16 }
 0x3ed   : > { %s1090_s16 = smov %s1086_s6 }
 0x3ee   :  { %467 = vsyncpa [#allocation9], 1 }
 0x3ef   :  { %469 = vsyncpa [#allocation9 + $0x1], 1 }
 0x3f0   :  { %470 = vsyncpa [#allocation12], 1 }
 0x3f1   :  { %472 = vsyncpa [#allocation12 + $0x1], 1 }
 0x3f2   :  { %473 = vsyncpa [#allocation10], 1 }
 0x3f3   :  { %475 = vsyncpa [#allocation10 + $0x1], 1 }

</bundles_post_ra>
